<compile_context>
chip_gen: v6e
topology: v6e:2x2x1
jax: 0.10.0
libtpu: 0.0.40
codegen_flags: <defaults>
</compile_context>

<pallas_src>
import functools

import jax
import jax.numpy as jnp
from jax.experimental import pallas as pl
from jax.experimental.pallas import tpu as pltpu


def _tpu_generation():
    """Best-effort TPU generation tag: 'v5' / 'v6' / 'v7' / None."""
    try:
        kind = jax.devices()[0].device_kind.lower()
    except Exception:
        return None
    if "v7" in kind or "7x" in kind:
        return "v7"
    if "v6" in kind:
        return "v6"
    if "v5" in kind:
        return "v5"
    return None


def _hinge_kernel(pos_ref, neg_ref, out_ref, acc_ref, *,
                  margin, n_items, inv_n, total_b, block_b, tiles_per_split,
                  compute_dtype):
    s = pl.program_id(0)          # core-split index ("parallel")
    i = pl.program_id(1)          # batch-tile index within split ("arbitrary")

    @pl.when(i == 0)
    def _():
        acc_ref[...] = jnp.zeros_like(acc_ref)

    # Small operand: fold the margin in here (saves a VPU pass over the big block).
    pos = pos_ref[...].astype(jnp.float32)                      # (TB, 1)
    pos_m = (pos - margin).astype(compute_dtype)                # (TB, 1)
    # Big operand stays in its compute dtype (bf16 on v6e/v7x, f32 elsewhere).
    neg = neg_ref[...].astype(compute_dtype)                    # (TB, N)

    diff = neg - pos_m                                          # single pass over (TB, N)
    neg_max = jnp.max(diff, axis=-1, keepdims=True).astype(jnp.float32)
    loss = jnp.maximum(neg_max, 0.0)                            # (TB, 1) f32

    if n_items is not None:
        # Impostor count summed in f32 (exact for any N, even with bf16 compare).
        cnt = jnp.sum((diff > 0).astype(jnp.float32), axis=-1, keepdims=True)
        rank = cnt * (inv_n * n_items)                          # (TB, 1) f32
        per_row = loss * jnp.log(rank + 1.0)                    # log -> EUP
    else:
        per_row = loss

    # Mask batch-padding rows of the ragged last tile. jnp.where (not multiply)
    # so stale / NaN VMEM in the out-of-bounds region cannot poison the sum.
    row0 = (s * tiles_per_split + i) * block_b
    row_ids = jax.lax.broadcasted_iota(jnp.int32, (block_b, 1), 0) + row0
    acc_ref[...] += jnp.where(row_ids < total_b, per_row, 0.0)

    @pl.when(i == pl.num_programs(1) - 1)
    def _():
        out_ref[0, 0] = jnp.sum(acc_ref[...])


def hinge_loss(pos_score, neg_score, *, margin=2.0, num_items=None,
               max_block_bytes=None, vmem_limit_bytes=None, num_core_splits=None):
    """pos_score: (B,), neg_score: (B, N) -> scalar f32 hinge loss."""
    B, N = neg_score.shape
    assert pos_score.shape == (B,)
    dtype = neg_score.dtype
    itemsize = jnp.dtype(dtype).itemsize

    gen = _tpu_generation()

    # Generation-aware defaults (block bytes for the (TB, N) neg tile, VMEM limit).
    if max_block_bytes is None:
        max_block_bytes = {"v7": 4 * 1024 * 1024,
                           "v6": 8 * 1024 * 1024,
                           "v5": 8 * 1024 * 1024}.get(gen, 4 * 1024 * 1024)
    if vmem_limit_bytes is None:
        vmem_limit_bytes = {"v7": 48 * 1024 * 1024,
                            "v6": 64 * 1024 * 1024,
                            "v5": 64 * 1024 * 1024}.get(gen, 32 * 1024 * 1024)
    if num_core_splits is None:
        num_core_splits = 2 if gen == "v7" else 1   # only v7x has 2 TCs per chip

    # bf16-native compute where the VPU supports it; f32 upcast on v5e / unknown.
    if dtype == jnp.bfloat16 and gen in ("v6", "v7"):
        compute_dtype = jnp.bfloat16
    else:
        compute_dtype = jnp.float32

    # Batch-tile height: multiple of the dtype's native sublane packing
    # (8 for f32, 16 for bf16, 32 for int8/fp8).
    sublane = max(8, 32 // itemsize)
    tb = max(1, max_block_bytes // max(N * itemsize, 1))
    tb = max(sublane, (tb // sublane) * sublane)
    b_round = ((B + sublane - 1) // sublane) * sublane
    tb = min(tb, b_round)
    # TODO(synk): if even the minimum-height (sublane, N) block times the pipeline
    # depth exceeds the VMEM limit (extremely wide N), the N axis should be tiled
    # as a second reduction axis with a running lane-max / impostor count.

    num_tiles = (B + tb - 1) // tb
    # Splits only when they divide the tile count exactly (no fully out-of-bounds blocks).
    if num_core_splits > 1 and num_tiles % num_core_splits == 0:
        splits = num_core_splits
    else:
        splits = 1
    tiles_per_split = num_tiles // splits

    # No padding / no copy of the big operand: ragged last tile handled in-kernel.
    pos2d = pos_score.reshape(B, 1)
    neg2d = neg_score

    def _index(s, i):
        return (s * tiles_per_split + i, 0)

    pos_spec = pl.BlockSpec((tb, 1), _index)
    neg_spec = pl.BlockSpec((tb, N), _index)
    if gen == "v7":
        # Deeper buffering hides per-step overhead/DMA jitter on v7x's faster HBM.
        try:
            neg_spec = pl.BlockSpec((tb, N), _index, pipeline_mode=pl.Buffered(3))
        except TypeError:
            pass

    kernel = functools.partial(
        _hinge_kernel,
        margin=float(margin),
        n_items=None if num_items is None else float(num_items),
        inv_n=1.0 / float(N),
        total_b=B, block_b=tb, tiles_per_split=tiles_per_split,
        compute_dtype=compute_dtype)

    cost = pl.CostEstimate(
        flops=int((4 if num_items is not None else 2) * B * N + 6 * B),
        transcendentals=int(B if num_items is not None else 0),
        bytes_accessed=int(B * N * itemsize + B * itemsize + 4 * splits))

    partials = pl.pallas_call(
        kernel,
        out_shape=jax.ShapeDtypeStruct((splits, 1), jnp.float32),
        grid=(splits, tiles_per_split),
        in_specs=[pos_spec, neg_spec],
        out_specs=pl.BlockSpec((1, 1), lambda s, i: (s, 0),
                               memory_space=pltpu.SMEM),
        scratch_shapes=[pltpu.VMEM((tb, 1), jnp.float32)],
        compiler_params=pltpu.CompilerParams(
            dimension_semantics=("parallel", "arbitrary"),
            vmem_limit_bytes=int(vmem_limit_bytes)),
        cost_estimate=cost,
    )(pos2d, neg2d)

    # Finalize once: sum per-split partials, divide by the true batch size.
    return jnp.sum(partials) / B


def _ref_hinge_loss(pos_score, neg_score, margin=2.0, num_items=None):
    # Pure-JAX reference mirroring the PyTorch forward (f32).
    pos_score = pos_score.astype(jnp.float32)
    neg_score = neg_score.astype(jnp.float32)
    neg_max = jnp.max(neg_score, axis=-1)
    loss = jnp.maximum(neg_max - pos_score + margin, 0.0)
    if num_items is not None:
        impostors = (neg_score - pos_score[:, None] + margin > 0).astype(jnp.float32)
        rank = jnp.mean(impostors, axis=-1) * num_items
        return jnp.mean(loss * jnp.log(rank + 1.0))
    return jnp.mean(loss)


if __name__ == "__main__":
    key = jax.random.PRNGKey(0)
    k1, k2, k3, k4, k5, k6 = jax.random.split(key, 6)

    # Small shapes consistent with pairwise ranking: 8 pairs, 128 sampled negatives.
    B, N = 8, 128
    pos = jax.random.normal(k1, (B,), dtype=jnp.float32)
    neg = jax.random.normal(k2, (B, N), dtype=jnp.float32)

    # branch 1: num_items=None
    out_a = hinge_loss(pos, neg, margin=2.0, num_items=None)
    jax.block_until_ready(out_a)
    ref_a = _ref_hinge_loss(pos, neg, margin=2.0, num_items=None)
    assert jnp.allclose(out_a, ref_a, rtol=1e-5, atol=1e-5), (out_a, ref_a)

    # branch 2: num_items set (item catalog of 1000)
    out_b = hinge_loss(pos, neg, margin=2.0, num_items=1000)
    jax.block_until_ready(out_b)
    ref_b = _ref_hinge_loss(pos, neg, margin=2.0, num_items=1000)
    assert jnp.allclose(out_b, ref_b, rtol=1e-5, atol=1e-5), (out_b, ref_b)

    # Tiled + ragged tail (no wrapper padding): B=20, tiny blocks -> 3 tiles, last one partial.
    B2, N2 = 20, 128
    pos2 = jax.random.normal(k3, (B2,), dtype=jnp.float32)
    neg2 = jax.random.normal(k4, (B2, N2), dtype=jnp.float32)
    out_c = hinge_loss(pos2, neg2, margin=2.0, num_items=500,
                       max_block_bytes=N2 * 4 * 8)
    jax.block_until_ready(out_c)
    ref_c = _ref_hinge_loss(pos2, neg2, margin=2.0, num_items=500)
    assert jnp.allclose(out_c, ref_c, rtol=1e-5, atol=1e-5), (out_c, ref_c)

    # Forced 2-way split + ragged tail: B=28 -> 4 tiles of 8 rows, 2 splits x 2 tiles.
    B3, N3 = 28, 128
    pos3 = jax.random.normal(k5, (B3,), dtype=jnp.float32)
    neg3 = jax.random.normal(k6, (B3, N3), dtype=jnp.float32)
    out_d = hinge_loss(pos3, neg3, margin=2.0, num_items=None,
                       max_block_bytes=N3 * 4 * 8, num_core_splits=2)
    jax.block_until_ready(out_d)
    ref_d = _ref_hinge_loss(pos3, neg3, margin=2.0, num_items=None)
    assert jnp.allclose(out_d, ref_d, rtol=1e-5, atol=1e-5), (out_d, ref_d)

    # Native bf16 path (bf16 in HBM; bf16 compute on v6e/v7x, f32 upcast on v5e).
    B4, N4 = 16, 128
    pos4 = jax.random.normal(k1, (B4,), dtype=jnp.bfloat16)
    neg4 = jax.random.normal(k2, (B4, N4), dtype=jnp.bfloat16)
    out_e = hinge_loss(pos4, neg4, margin=2.0, num_items=1000)
    jax.block_until_ready(out_e)
    ref_e = _ref_hinge_loss(pos4, neg4, margin=2.0, num_items=1000)
    assert jnp.allclose(out_e, ref_e, rtol=2e-2, atol=2e-2), (out_e, ref_e)

    print("KERNEL_OK")
</pallas_src>

<mosaic_0001>
module attributes {stable_mosaic.version = 11 : i64} {
  func.func @_hinge_kernel(%arg0: i32, %arg1: i32, %arg2: memref<8x1xf32, #tpu.memory_space<vmem>>, %arg3: memref<8x128xf32, #tpu.memory_space<vmem>>, %arg4: memref<1x1xf32, #tpu.memory_space<smem>>, %arg5: memref<8x1xf32, #tpu.memory_space<vmem>>) attributes {dimension_semantics = [#tpu.dimension_semantics<parallel>, #tpu.dimension_semantics<arbitrary>], iteration_bounds = array<i64: 1, 1>, scalar_prefetch = 0 : i64, scratch_operands = 1 : i64, tpu.core_type = #tpu.core_type<tc>, window_params = [{transform_indices = @transform_0, window_bounds = array<i64: 8, 1>}, {transform_indices = @transform_1, window_bounds = array<i64: 8, 128>}, {transform_indices = @transform_2, window_bounds = array<i64: 1, 1>}]} {
    %c0_i32 = arith.constant 0 : i32
    %0 = arith.cmpi eq, %arg1, %c0_i32 : i32
    %1 = arith.extui %0 : i1 to i32
    %c0_i32_0 = arith.constant 0 : i32
    %2 = arith.cmpi ne, %1, %c0_i32_0 : i32
    scf.if %2 {
      %cst_14 = arith.constant 0.000000e+00 : f32
      %29 = vector.broadcast %cst_14 : f32 to vector<8x1xf32>
      %c0_15 = arith.constant 0 : index
      %c0_16 = arith.constant 0 : index
      %30 = vector.load %arg5[%c0_15, %c0_16] : memref<8x1xf32, #tpu.memory_space<vmem>>, vector<8x1xf32>
      tpu.vector_store %arg5[%c0_15, %c0_16], %29 {strides = array<i32>} : memref<8x1xf32, #tpu.memory_space<vmem>>, vector<8x1xf32>,
    } else {
    }
    %c0 = arith.constant 0 : index
    %c0_1 = arith.constant 0 : index
    %3 = vector.load %arg2[%c0, %c0_1] : memref<8x1xf32, #tpu.memory_space<vmem>>, vector<8x1xf32>
    %cst = arith.constant 2.000000e+00 : f32
    %4 = vector.broadcast %cst : f32 to vector<8x1xf32>
    %5 = arith.subf %3, %4 : vector<8x1xf32>
    %c0_2 = arith.constant 0 : index
    %c0_3 = arith.constant 0 : index
    %6 = vector.load %arg3[%c0_2, %c0_3] : memref<8x128xf32, #tpu.memory_space<vmem>>, vector<8x128xf32>
    %7 = vector.broadcast %5 : vector<8x1xf32> to vector<8x128xf32>
    %8 = arith.subf %6, %7 : vector<8x128xf32>
    %cst_4 = arith.constant dense<0xFF800000> : vector<8xf32>
    %9 = vector.multi_reduction <maximumf>, %8, %cst_4 [1] : vector<8x128xf32> to vector<8xf32>
    %10 = vector.shape_cast %9 : vector<8xf32> to vector<8x1xf32>
    %cst_5 = arith.constant 0.000000e+00 : f32
    %11 = vector.broadcast %cst_5 : f32 to vector<8x1xf32>
    %12 = arith.maximumf %10, %11 : vector<8x1xf32>
    %c1_i32 = arith.constant 1 : i32
    %13 = arith.muli %arg0, %c1_i32 : i32
    %14 = arith.addi %13, %arg1 : i32
    %c8_i32 = arith.constant 8 : i32
    %15 = arith.muli %14, %c8_i32 : i32
    %16 = tpu.iota {dimensions = array<i32: 0>} : vector<8x1xi32>
    %17 = vector.broadcast %15 : i32 to vector<8x1xi32>
    %18 = arith.addi %16, %17 : vector<8x1xi32>
    %c0_6 = arith.constant 0 : index
    %c0_7 = arith.constant 0 : index
    %19 = vector.load %arg5[%c0_6, %c0_7] : memref<8x1xf32, #tpu.memory_space<vmem>>, vector<8x1xf32>
    %c8_i32_8 = arith.constant 8 : i32
    %20 = vector.broadcast %c8_i32_8 : i32 to vector<8x1xi32>
    %21 = arith.cmpi slt, %18, %20 : vector<8x1xi32>
    %cst_9 = arith.constant 0.000000e+00 : f32
    %22 = vector.broadcast %cst_9 : f32 to vector<8x1xf32>
    %23 = arith.select %21, %12, %22 : vector<8x1xi1>, vector<8x1xf32>
    %24 = arith.addf %19, %23 : vector<8x1xf32>
    %c0_10 = arith.constant 0 : index
    %c0_11 = arith.constant 0 : index
    %25 = vector.load %arg5[%c0_10, %c0_11] : memref<8x1xf32, #tpu.memory_space<vmem>>, vector<8x1xf32>
    tpu.vector_store %arg5[%c0_10, %c0_11], %24 {strides = array<i32>} : memref<8x1xf32, #tpu.memory_space<vmem>>, vector<8x1xf32>,
    %c0_i32_12 = arith.constant 0 : i32
    %26 = arith.cmpi eq, %arg1, %c0_i32_12 : i32
    %27 = arith.extui %26 : i1 to i32
    %c0_i32_13 = arith.constant 0 : i32
    %28 = arith.cmpi ne, %27, %c0_i32_13 : i32
    scf.if %28 {
      %c0_14 = arith.constant 0 : index
      %c0_15 = arith.constant 0 : index
      %29 = vector.load %arg5[%c0_14, %c0_15] : memref<8x1xf32, #tpu.memory_space<vmem>>, vector<8x1xf32>
      %30 = vector.shape_cast %29 : vector<8x1xf32> to vector<1x8x1xf32>
      %cst_16 = arith.constant dense<0.000000e+00> : vector<1xf32>
      %31 = vector.multi_reduction <add>, %30, %cst_16 [1, 2] : vector<1x8x1xf32> to vector<1xf32>
      %32 = vector.shape_cast %31 : vector<1xf32> to vector<1x1x1xf32>
      %33 = vector.extract %32[0, 0, 0] : f32 from vector<1x1x1xf32>
      %c0_17 = arith.constant 0 : index
      %c0_18 = arith.constant 0 : index
      %34 = memref.load %arg4[%c0_17, %c0_18] : memref<1x1xf32, #tpu.memory_space<smem>>
      memref.store %33, %arg4[%c0_17, %c0_18] : memref<1x1xf32, #tpu.memory_space<smem>>
    } else {
    }
    return
  }
  func.func @transform_0(%arg0: i32, %arg1: i32) -> (i32, i32) {
    %c1_i32 = arith.constant 1 : i32
    %0 = arith.muli %arg0, %c1_i32 : i32
    %1 = arith.addi %0, %arg1 : i32
    %c0_i32 = arith.constant 0 : i32
    %c0_i32_0 = arith.constant 0 : i32
    return %1, %c0_i32 : i32, i32
  }
  func.func @transform_1(%arg0: i32, %arg1: i32) -> (i32, i32) {
    %c1_i32 = arith.constant 1 : i32
    %0 = arith.muli %arg0, %c1_i32 : i32
    %1 = arith.addi %0, %arg1 : i32
    %c0_i32 = arith.constant 0 : i32
    %c0_i32_0 = arith.constant 0 : i32
    return %1, %c0_i32 : i32, i32
  }
  func.func @transform_2(%arg0: i32, %arg1: i32) -> (i32, i32) {
    %c0_i32 = arith.constant 0 : i32
    %c0_i32_0 = arith.constant 0 : i32
    return %arg0, %c0_i32 : i32, i32
  }
}

</mosaic_0001>

<bundles_post_ra>
// kernel: tpu_custom_call.1
= control target key start
LH: loop header
LB: loop body
LE: loop exit
PB: predicated region body
PF: predicated region fallthrough
CT: control target
= control target key end

     0   :  { %s161_s0 = inlined_call_operand.vmem [shape: f32[8,1], index: 0, kind: input, shape index: {}]   ;;  %s162_s1 = inlined_call_operand.vmem [shape: f32[8,128], index: 1, kind: input, shape index: {}]   ;;  %s163_s2 = inlined_call_operand.hbm [shape: f32[1,1], index: 2, kind: output, shape index: {}]  }
   0x1   :  { %v52_v0 = vld [vmem:[%s161_s0] sm:$0xff] }
   0x2   :  { %7 = vsyncpa [#allocation4], 0  ;;  %v134_v1 = vmov 0   ;;  %v117_v2 = vadd.f32 -2.0, %v52_v0  ;;  %v54_v3 = vld [vmem:[%s162_s1] sm:$0xff]  ;;  %vm50_vm0 = vcmask 7168  }
   0x3   :  { %123 = vset.pattern.permute.xlu0 %v134_v1  ;;  %v135_v6 = vmov 0.0   ;;  %s136_s1 = smov [#allocation3]  }
   0x4   :  { %57 = vperm.xlu0 %123, %v117_v2   ;;  %51 = vst.msk [vmem:[#allocation2] sm:$0xff] %vm50_vm0, %v135_v6 }
   0xb   :  { %v70_v8 = vld [vmem:[#allocation2] sm:$0xff] }
  0x7f   :  { %v58_v4 = vpop.permute.xlu0 %57 }
  0x80   :  { %v60_v5 = vsub.f32 %v54_v3, %v58_v4 }
  0x82   :  { %61 = vmax.xlane.f32.xlu0 %v60_v5 }
 0x10b   :  { %v62_v7 = vpop.xlane.xlu0 %61 }
 0x10c   :  { %v63_v9 = vmax.f32 %v62_v7, 0.0 }
 0x10e   :  { %v73_v10 = vadd.f32 %v70_v8, %v63_v9 }
 0x110   :  { %75 = vst.msk [vmem:[#allocation2] sm:$0xff] %vm50_vm0, %v73_v10 }
 0x117   :  { %v79_v11 = vld [vmem:[#allocation2] sm:$0xff] }
 0x118   :  { %v80_v12 = vsel %vm50_vm0, %v79_v11, 0.0 }
 0x119   :  { %81 = vadd.xlane.f32.xlu1 %v80_v12 }
 0x1a2   :  { %v82_v13 = vpop.xlane.xlu1 %81 }
 0x1a3   :  { %v83_v14 = vrot.slane %v82_v13, 4 }
 0x1a5   :  { %v84_v15 = vadd.f32 %v83_v14, %v82_v13 }
 0x1a7   :  { %v85_v16 = vrot.slane %v84_v15, 2 }
 0x1a9   :  { %v86_v17 = vadd.f32 %v85_v16, %v84_v15 }
 0x1ab   :  { %v87_v18 = vrot.slane %v86_v17, 1 }
 0x1ad   :  { %v88_v19 = vadd.f32 %v87_v18, %v86_v17 }
 0x1af   :  { %118 = vpush %v88_v19 }
 0x1e0   :  { %s119_s0 = spop %118 }
 0x1e1   :  { %91 = sst [smem:[#allocation3]] %s119_s0 }
 0x1e2   :  { %99 = dma.smem_to_hbm %s136_s1, 16, %s163_s2, [#allocation4]  }
 0x1e3   :  { %132 = dma.done.wait [#allocation4], 16  }
 0x1e4   :  { %133 = vsyncadd [#allocation4], 4294967280 }
 0x1e5   :  { %103 = sfence }
 0x1e6   :  { %104 = vsyncpa [#allocation4], 1 }

</bundles_post_ra>
